<compile_context>
chip_gen: v7x
topology: tpu7x:2x2x1
jax: 0.10.0
libtpu: 0.0.40
codegen_flags: <defaults>
</compile_context>

<pallas_src>
import jax
import jax.numpy as jnp
from jax.experimental import pallas as pl
from jax.experimental.pallas import tpu as pltpu


def _constant_sigma_kernel(logsigma_ref, sigma_ref):
    # logsigma is a scalar in SMEM; exp on a scalar, broadcast-fill the
    # lane-dense (1, padded_D) output slab in a single vector store.
    sigma_val = jnp.exp(logsigma_ref[0])
    sigma_ref[...] = jnp.full(sigma_ref.shape, sigma_val, dtype=sigma_ref.dtype)


def identity_normal_constant_sigma(x, logsigma, out_dim):
    """JAX wrapper reproducing Identity_Normal_Constant_Sigma.forward.

    Args:
      x:        (B, F) float32 array — returned unchanged (true identity,
                no copy, no HBM traffic).
      logsigma: (1,)   float32 array (parameter or buffer value).
      out_dim:  int, net_dims[-1] — length of the expanded sigma vector.

    Returns:
      (y, sigma) with y is x and sigma == exp(logsigma) broadcast to (out_dim,).
    """
    # Pad the lane dimension to a multiple of 128 so the store is lane-dense
    # (unmasked vst); slice back to out_dim afterwards.
    padded_d = max(128, ((out_dim + 127) // 128) * 128)

    sigma2d = pl.pallas_call(
        _constant_sigma_kernel,
        out_shape=jax.ShapeDtypeStruct((1, padded_d), jnp.float32),
        in_specs=[
            pl.BlockSpec(memory_space=pltpu.SMEM),   # logsigma scalar
        ],
        out_specs=pl.BlockSpec(memory_space=pltpu.VMEM),
    )(logsigma)

    sigma = sigma2d[0, :out_dim]
    # Identity output: pass x straight through (no kernel copy needed).
    return x, sigma


if __name__ == "__main__":
    # Deterministic setup mirroring the module's __init__:
    #   net_dims = [..., out_dim], init_logsigma = -0.5; fix_logsigma does not
    #   change forward semantics.
    batch, hidden = 2, 32
    net_dims = [hidden, hidden]          # output dim = net_dims[-1] = 32
    init_logsigma = -0.5

    key = jax.random.PRNGKey(0)
    x = jax.random.normal(key, (batch, hidden), dtype=jnp.float32)
    logsigma = jnp.array([init_logsigma], dtype=jnp.float32)

    y, sigma = identity_normal_constant_sigma(x, logsigma, net_dims[-1])
    jax.block_until_ready((y, sigma))

    # Reference check (pure JAX).
    y_ref = x
    sigma_ref = jnp.exp(jnp.broadcast_to(logsigma, (net_dims[-1],)))
    assert y.shape == x.shape and sigma.shape == (net_dims[-1],)
    assert jnp.allclose(y, y_ref)
    assert jnp.allclose(sigma, sigma_ref, rtol=1e-6)

    print("KERNEL_OK")
</pallas_src>

<mosaic_0001>
module attributes {stable_mosaic.version = 11 : i64} {
  func.func @_constant_sigma_kernel(%arg0: memref<1xf32, #tpu.memory_space<smem>>, %arg1: memref<1x128xf32, #tpu.memory_space<vmem>>) attributes {dimension_semantics = [], scalar_prefetch = 0 : i64, scratch_operands = 0 : i64, tpu.core_type = #tpu.core_type<tc>} {
    %c0 = arith.constant 0 : index
    %0 = memref.load %arg0[%c0] : memref<1xf32, #tpu.memory_space<smem>>
    %1 = math.exp %0 : f32
    %2 = vector.broadcast %1 : f32 to vector<1x128xf32>
    %c0_0 = arith.constant 0 : index
    %c0_1 = arith.constant 0 : index
    %3 = vector.load %arg1[%c0_0, %c0_1] : memref<1x128xf32, #tpu.memory_space<vmem>>, vector<1x128xf32>
    tpu.vector_store %arg1[%c0_0, %c0_1], %2 {strides = array<i32>} : memref<1x128xf32, #tpu.memory_space<vmem>>, vector<1x128xf32>,
    return
  }
}

</mosaic_0001>

<bundles_post_ra>
// kernel: tpu_custom_call.1
= control target key start
LH: loop header
LB: loop body
LE: loop exit
PB: predicated region body
PF: predicated region fallthrough
CT: control target
= control target key end

     0   :  { %s86_s0 = inlined_call_operand.<no memory space> [shape: f32[1], index: 0, kind: input, shape index: {}]   ;;  %s87_s1 = inlined_call_operand.hbm [shape: f32[1,128], index: 1, kind: output, shape index: {}]  }
   0x1   :  { %v11_v0 = vstv %s86_s0 }
   0x2   :  { %7 = vsyncpa [#allocation4], 0  ;;  %v12_v1 = vmul.f32 1.442695, %v11_v0  ;;  %s60_s8 = smov [#allocation3]  }
   0x3   :  { %s23_s9 = sshll.u32 %s60_s8, 4  ;;  %s24_s9 = int_to_ptr.vmem [resolvable:$true] %s23_s9 }
   0x4   :  { %34 = vpow2.f32 %v12_v1  ;;  %s36_s11 = scalar_lea.vmem %s24_s9, 16  ;;  %s40_s12 = scalar_lea.vmem %s24_s9, 32 }
   0x5   :  { %p37_p0 = scmp.ne.s32.totalorder %s24_s9, %s36_s11  ;;  %p41_p1 = scmp.lt.s32.totalorder %s24_s9, %s24_s9 }
   0x6   :  { %p42_p2 = scmp.lt.s32.totalorder %s40_s12, %s36_s11 }
   0x8   :  { %p43_p3 = por %p42_p2, %p41_p1 }
   0xa   :  { %p44_p4 = pnand %p43_p3, %p37_p0 }
   0xe   :  { %v35_v2 = vpop.eup %34 }
   0xf   :  { %31 = vpush %v35_v2 }
  0x40   :  { %s32_s10 = spop %31 }
  0x41   :  { %v15_v3 = vstv %s32_s10 }
  0x42   :  { %16 = vst [vmem:[#allocation3] sm:$0x1] %v15_v3 }
  0x43   :  { %47 = shalt.err (!%p44_p4)
}
  0x44   :  { %s48_s14 = scalar_lea.hbm %s87_s1, 16 }
  0x45   :  { %p49_p5 = scmp.ne.s32.totalorder %s87_s1, %s48_s14  ;;  %p52_p6 = scmp.lt.u32.totalorder %s48_s14, %s87_s1 }
  0x47   :  { %p54_p7 = pnand %p52_p6, %p49_p5 }
  0x49   :  { %57 = shalt.err (!%p54_p7)
}
  0x4a   :  { %26 = dma.vmem_to_hbm [thread:$0]  %s24_s9, 16, %s87_s1, [#allocation4]  }
  0x4b   :  { %58 = dma.done.wait [#allocation4], 16  }
  0x4c   :  { %59 = vsyncadd [#allocation4], 4294967280 }
  0x4d   :  { %30 = vsyncpa [#allocation4], 1 }

</bundles_post_ra>
